<compile_context>
chip_gen: v5e
topology: v5e:2x2
jax: 0.10.0
libtpu: 0.0.40
codegen_flags: <defaults>
</compile_context>

<pallas_src>
import math
import functools

import jax
import jax.numpy as jnp
from jax.experimental import pallas as pl
from jax.experimental.pallas import tpu as pltpu


# Tile targets (largest aligned divisor <= target is chosen per call).
# v5e/v6e (128 MiB VMEM) could raise VMEM_LIMIT to ~64-100 MiB; 48 MiB is safe on v7x.
TILE_M = 512
TILE_N = 512
TILE_K = 512
TILE_V = 512       # vocab tile in the fused loss kernel
TILE_Q = 256       # attention q tile
TILE_KV = 256      # attention kv tile
VMEM_LIMIT = 48 * 1024 * 1024


def _tile(dim, target, align=128):
    """Largest tile <= target that divides dim and is a multiple of `align`.
    Falls back to the full dim (always a legal block size)."""
    if dim <= target:
        return dim
    t = (target // align) * align
    while t > 0:
        if dim % t == 0:
            return t
        t -= align
    return dim


def _mosaic(dims):
    return pltpu.CompilerParams(dimension_semantics=dims, vmem_limit_bytes=VMEM_LIMIT)


# ----------------------------- Pallas kernels ------------------------------ #

def _linear_kernel(x_ref, w_ref, b_ref, o_ref, acc_ref, *, activation):
    k = pl.program_id(2)

    @pl.when(k == 0)
    def _():
        acc_ref[...] = jnp.zeros_like(acc_ref)

    acc_ref[...] += jnp.dot(x_ref[...], w_ref[...], preferred_element_type=jnp.float32)

    @pl.when(k == pl.num_programs(2) - 1)
    def _():
        h = acc_ref[...] + b_ref[...].astype(jnp.float32)
        if activation == "gelu":
            h = jax.nn.gelu(h, approximate=True)
        o_ref[...] = h.astype(o_ref.dtype)


def _linear_residual_kernel(x_ref, w_ref, b_ref, r_ref, o_ref, acc_ref):
    k = pl.program_id(2)

    @pl.when(k == 0)
    def _():
        acc_ref[...] = jnp.zeros_like(acc_ref)

    acc_ref[...] += jnp.dot(x_ref[...], w_ref[...], preferred_element_type=jnp.float32)

    @pl.when(k == pl.num_programs(2) - 1)
    def _():
        h = acc_ref[...] + b_ref[...].astype(jnp.float32) + r_ref[...].astype(jnp.float32)
        o_ref[...] = h.astype(o_ref.dtype)


def _ln_linear_kernel(x_ref, g_ref, bln_ref, w_ref, b_ref, o_ref, xn_ref, acc_ref,
                      *, activation, nk):
    # LN is computed ONCE per row tile (at the first (j, k) step) into a bf16 VMEM
    # scratch; the weight is tiled along K so its residency is 2*tk*tn (v7x-friendly).
    j = pl.program_id(1)
    k = pl.program_id(2)
    tk = xn_ref.shape[2]

    @pl.when(jnp.logical_and(j == 0, k == 0))
    def _():
        x = x_ref[...].astype(jnp.float32)
        mu = jnp.mean(x, axis=-1, keepdims=True)
        var = jnp.mean(jnp.square(x - mu), axis=-1, keepdims=True)
        xn = (x - mu) * jax.lax.rsqrt(var + 1e-5) * g_ref[...] + bln_ref[...]
        for kk in range(nk):                               # static lane slices
            xn_ref[kk] = xn[:, kk * tk:(kk + 1) * tk].astype(xn_ref.dtype)

    @pl.when(k == 0)
    def _():
        acc_ref[...] = jnp.zeros_like(acc_ref)

    acc_ref[...] += jnp.dot(xn_ref[k], w_ref[...], preferred_element_type=jnp.float32)

    @pl.when(k == pl.num_programs(2) - 1)
    def _():
        h = acc_ref[...] + b_ref[...].astype(jnp.float32)
        if activation == "gelu":
            h = jax.nn.gelu(h, approximate=True)
        o_ref[...] = h.astype(o_ref.dtype)


def _flash_attn_kernel(q_ref, k_ref, v_ref, o_ref, q_scr, m_ref, l_ref, acc_ref,
                       *, scale, tq, tk, q_axis, kv_axis):
    qi = pl.program_id(q_axis)
    ki = pl.program_id(kv_axis)
    nk = pl.num_programs(kv_axis)

    @pl.when(ki == 0)
    def _():
        m_ref[...] = jnp.full_like(m_ref, -jnp.inf)
        l_ref[...] = jnp.zeros_like(l_ref)
        acc_ref[...] = jnp.zeros_like(acc_ref)
        # 1/sqrt(dh) applied once per q tile (not per kv step), stored in bf16 for the MXU.
        q_scr[...] = (q_ref[0].astype(jnp.float32) * scale).astype(q_scr.dtype)

    needed = ki * tk <= qi * tq + (tq - 1)        # tile intersects causal region
    on_diag = ki * tk + (tk - 1) > qi * tq        # tile crosses the diagonal -> mask

    def scores():
        return jax.lax.dot_general(q_scr[...], k_ref[0], (((1,), (1,)), ((), ())),
                                   preferred_element_type=jnp.float32)  # (tq, tk)

    def update(s):
        m_prev = m_ref[...]
        m_new = jnp.maximum(m_prev, jnp.max(s, axis=-1, keepdims=True))
        alpha = jnp.exp(m_prev - m_new)
        p = jnp.exp(s - m_new)
        l_ref[...] = alpha * l_ref[...] + jnp.sum(p, axis=-1, keepdims=True)
        acc_ref[...] = alpha * acc_ref[...] + jnp.dot(
            p.astype(v_ref.dtype), v_ref[0], preferred_element_type=jnp.float32)
        m_ref[...] = m_new

    @pl.when(jnp.logical_and(needed, on_diag))            # masked path: diagonal tiles only
    def _():
        s = scores()
        row = qi * tq + jax.lax.broadcasted_iota(jnp.int32, (tq, tk), 0)
        col = ki * tk + jax.lax.broadcasted_iota(jnp.int32, (tq, tk), 1)
        update(jnp.where(col <= row, s, -jnp.inf))

    @pl.when(jnp.logical_and(needed, jnp.logical_not(on_diag)))   # interior: no mask VPU work
    def _():
        update(scores())

    @pl.when(ki == nk - 1)
    def _():
        o_ref[0] = (acc_ref[...] *
                    pl.reciprocal(l_ref[...], approx=True)).astype(o_ref.dtype)


def _ln_logits_loss_kernel(lab_ref, x_ref, g_ref, bln_ref, w_ref, b_ref,
                           logits_ref, nll_ref, xn_ref, m_ref, l_ref, c_ref, *, tv):
    # Fused final-LN + logits matmul + cross-entropy. Grid = (M tiles, V tiles); the V
    # axis is an online logsumexp reduction; the label logit is gathered by iota compare
    # (no one-hot). LN is hoisted into a bf16 scratch at j==0 (not recomputed per vocab
    # tile). Per-row nll is emitted (summed in XLA) so the M axis can be "parallel".
    j = pl.program_id(1)
    nj = pl.num_programs(1)

    @pl.when(j == 0)
    def _():
        x = x_ref[...].astype(jnp.float32)
        mu = jnp.mean(x, axis=-1, keepdims=True)
        var = jnp.mean(jnp.square(x - mu), axis=-1, keepdims=True)
        xn = (x - mu) * jax.lax.rsqrt(var + 1e-5) * g_ref[...] + bln_ref[...]
        xn_ref[...] = xn.astype(xn_ref.dtype)
        m_ref[...] = jnp.full_like(m_ref, -jnp.inf)
        l_ref[...] = jnp.zeros_like(l_ref)
        c_ref[...] = jnp.zeros_like(c_ref)

    logits = jnp.dot(xn_ref[...], w_ref[...],
                     preferred_element_type=jnp.float32) + b_ref[...].astype(jnp.float32)
    logits_ref[...] = logits.astype(logits_ref.dtype)

    m_prev = m_ref[...]
    m_new = jnp.maximum(m_prev, jnp.max(logits, axis=-1, keepdims=True))
    l_ref[...] = l_ref[...] * jnp.exp(m_prev - m_new) + \
        jnp.sum(jnp.exp(logits - m_new), axis=-1, keepdims=True)
    m_ref[...] = m_new

    col = j * tv + jax.lax.broadcasted_iota(jnp.int32, logits.shape, 1)
    c_ref[...] += jnp.sum(jnp.where(col == lab_ref[...], logits, 0.0),
                          axis=-1, keepdims=True)

    @pl.when(j == nj - 1)
    def _():
        nll_ref[...] = m_ref[...] + jnp.log(l_ref[...]) - c_ref[...]      # (tm, 1)


# ------------------------------- wrappers ---------------------------------- #

def linear(x, w, b, residual=None, activation=None):
    M, K = x.shape
    N = w.shape[1]
    tm = _tile(M, TILE_M, align=8)
    tn = _tile(N, TILE_N)
    tk = _tile(K, TILE_K)
    grid = (M // tm, N // tn, K // tk)
    x_spec = pl.BlockSpec((tm, tk), lambda i, j, k: (i, k))
    # TODO(synk): on v7x decode shapes with exposed DMA, consider pipeline_mode=pl.Buffered(3).
    w_spec = pl.BlockSpec((tk, tn), lambda i, j, k: (k, j))
    b_spec = pl.BlockSpec((1, tn), lambda i, j, k: (0, j))
    o_spec = pl.BlockSpec((tm, tn), lambda i, j, k: (i, j))
    scratch = [pltpu.VMEM((tm, tn), jnp.float32)]
    cp = _mosaic(("parallel", "parallel", "arbitrary"))
    if residual is None:
        kern = functools.partial(_linear_kernel, activation=activation)
        return pl.pallas_call(
            kern, out_shape=jax.ShapeDtypeStruct((M, N), x.dtype), grid=grid,
            in_specs=[x_spec, w_spec, b_spec], out_specs=o_spec,
            scratch_shapes=scratch, compiler_params=cp,
        )(x, w, b.reshape(1, N))
    r_spec = pl.BlockSpec((tm, tn), lambda i, j, k: (i, j))   # same block across k -> fetched once
    return pl.pallas_call(
        _linear_residual_kernel, out_shape=jax.ShapeDtypeStruct((M, N), x.dtype),
        grid=grid, in_specs=[x_spec, w_spec, b_spec, r_spec], out_specs=o_spec,
        scratch_shapes=scratch, compiler_params=cp,
    )(x, w, b.reshape(1, N), residual)


def ln_linear(x, gamma, beta, w, b, activation=None):
    M, K = x.shape
    N = w.shape[1]
    tm = _tile(M, TILE_M, align=8)
    tn = _tile(N, TILE_N)
    tk = _tile(K, TILE_K)
    nk = K // tk
    kern = functools.partial(_ln_linear_kernel, activation=activation, nk=nk)
    return pl.pallas_call(
        kern,
        out_shape=jax.ShapeDtypeStruct((M, N), x.dtype),
        grid=(M // tm, N // tn, nk),
        in_specs=[pl.BlockSpec((tm, K), lambda i, j, k: (i, 0)),   # full-K row (for LN), once per i
                  pl.BlockSpec((1, K), lambda i, j, k: (0, 0)),
                  pl.BlockSpec((1, K), lambda i, j, k: (0, 0)),
                  pl.BlockSpec((tk, tn), lambda i, j, k: (k, j)),
                  pl.BlockSpec((1, tn), lambda i, j, k: (0, j))],
        out_specs=pl.BlockSpec((tm, tn), lambda i, j, k: (i, j)),
        scratch_shapes=[pltpu.VMEM((nk, tm, tk), jnp.bfloat16),    # normalized rows, bf16
                        pltpu.VMEM((tm, tn), jnp.float32)],
        compiler_params=_mosaic(("parallel", "arbitrary", "arbitrary")),
    )(x, gamma.reshape(1, K), beta.reshape(1, K), w, b.reshape(1, N))


def causal_attention(qkv, B, S, n_heads):
    # qkv: (B*S, 3d) bf16 with column layout [q (all heads) | k | v], each head dh-wide.
    M, three_d = qkv.shape
    d = three_d // 3
    dh = d // n_heads
    scale = 1.0 / math.sqrt(dh)
    tq = _tile(S, TILE_Q, align=8)
    tk = _tile(S, TILE_KV, align=8)
    nq, nk = S // tq, S // tk
    scratch = [pltpu.VMEM((tq, dh), jnp.bfloat16),     # scaled q
               pltpu.VMEM((tq, 1), jnp.float32),       # m
               pltpu.VMEM((tq, 1), jnp.float32),       # l
               pltpu.VMEM((tq, dh), jnp.float32)]      # acc

    def kv_block(qi, ki):
        # Clamp above-diagonal kv tiles to the last needed block: pl.when skips the
        # compute and the unchanged block index means the pipeline issues NO DMA.
        return jnp.minimum(ki, (qi * tq + tq - 1) // tk)

    if dh % 128 == 0:
        # No XLA transposes: slice per-head (tq, dh) / (tk, dh) tiles straight from the
        # (B, S, 3d) qkv buffer and write a lane-dense (B, S, d) output.
        H = n_heads
        qkv3 = qkv.reshape(B, S, three_d)
        kern = functools.partial(_flash_attn_kernel, scale=scale, tq=tq, tk=tk,
                                 q_axis=2, kv_axis=3)
        out = pl.pallas_call(
            kern,
            out_shape=jax.ShapeDtypeStruct((B, S, d), qkv.dtype),
            grid=(B, H, nq, nk),
            in_specs=[pl.BlockSpec((1, tq, dh), lambda b, h, qi, ki: (b, qi, h)),
                      pl.BlockSpec((1, tk, dh),
                                   lambda b, h, qi, ki: (b, kv_block(qi, ki), H + h)),
                      pl.BlockSpec((1, tk, dh),
                                   lambda b, h, qi, ki: (b, kv_block(qi, ki), 2 * H + h))],
            out_specs=pl.BlockSpec((1, tq, dh), lambda b, h, qi, ki: (b, qi, h)),
            scratch_shapes=scratch,
            compiler_params=_mosaic(("parallel", "parallel", "parallel", "arbitrary")),
        )(qkv3, qkv3, qkv3)
        return out.reshape(M, d)

    # Fallback for dh not lane-aligned: (B*H, S, dh) layout via XLA transposes.
    # TODO(synk): for dh < 128, process 128//dh heads per lane-dense block instead of
    # round-tripping through XLA transposes (skipped here for lowering safety).
    qkv5 = qkv.reshape(B, S, 3, n_heads, dh)
    q = qkv5[:, :, 0].transpose(0, 2, 1, 3).reshape(B * n_heads, S, dh)
    k = qkv5[:, :, 1].transpose(0, 2, 1, 3).reshape(B * n_heads, S, dh)
    v = qkv5[:, :, 2].transpose(0, 2, 1, 3).reshape(B * n_heads, S, dh)
    kern = functools.partial(_flash_attn_kernel, scale=scale, tq=tq, tk=tk,
                             q_axis=1, kv_axis=2)
    out = pl.pallas_call(
        kern,
        out_shape=jax.ShapeDtypeStruct((B * n_heads, S, dh), q.dtype),
        grid=(B * n_heads, nq, nk),
        in_specs=[pl.BlockSpec((1, tq, dh), lambda b, qi, ki: (b, qi, 0)),
                  pl.BlockSpec((1, tk, dh), lambda b, qi, ki: (b, kv_block(qi, ki), 0)),
                  pl.BlockSpec((1, tk, dh), lambda b, qi, ki: (b, kv_block(qi, ki), 0))],
        out_specs=pl.BlockSpec((1, tq, dh), lambda b, qi, ki: (b, qi, 0)),
        scratch_shapes=scratch,
        compiler_params=_mosaic(("parallel", "parallel", "arbitrary")),
    )(q, k, v)
    return out.reshape(B, n_heads, S, dh).transpose(0, 2, 1, 3).reshape(M, d)


def ln_logits_and_loss(x, gamma, beta, w, b, labels):
    M, K = x.shape
    V = w.shape[1]
    tm = _tile(M, TILE_M, align=8)
    tv = _tile(V, TILE_V)
    kern = functools.partial(_ln_logits_loss_kernel, tv=tv)
    logits, nll = pl.pallas_call(
        kern,
        out_shape=(jax.ShapeDtypeStruct((M, V), x.dtype),        # bf16 logits (HBM writeback /2)
                   jax.ShapeDtypeStruct((M, 1), jnp.float32)),   # per-row nll, summed in XLA
        grid=(M // tm, V // tv),
        in_specs=[pl.BlockSpec((tm, 1), lambda i, j: (i, 0)),    # labels
                  pl.BlockSpec((tm, K), lambda i, j: (i, 0)),    # x (fetched once per i)
                  pl.BlockSpec((1, K), lambda i, j: (0, 0)),     # ln gamma
                  pl.BlockSpec((1, K), lambda i, j: (0, 0)),     # ln beta
                  pl.BlockSpec((K, tv), lambda i, j: (0, j)),    # fc weight (bf16)
                  pl.BlockSpec((1, tv), lambda i, j: (0, j))],   # fc bias
        out_specs=(pl.BlockSpec((tm, tv), lambda i, j: (i, j)),
                   pl.BlockSpec((tm, 1), lambda i, j: (i, 0))),
        scratch_shapes=[pltpu.VMEM((tm, K), jnp.bfloat16),       # normalized rows (LN hoisted)
                        pltpu.VMEM((tm, 1), jnp.float32),
                        pltpu.VMEM((tm, 1), jnp.float32),
                        pltpu.VMEM((tm, 1), jnp.float32)],
        compiler_params=_mosaic(("parallel", "arbitrary")),      # M axis megacore-shardable
    )(labels.reshape(M, 1).astype(jnp.int32), x,
      gamma.reshape(1, K), beta.reshape(1, K), w, b.reshape(1, V))
    # TODO(synk): no ignore-index/padding handling (matches the reference nn.CrossEntropyLoss default).
    return logits, jnp.sum(nll) / M


# ------------------------------- model glue --------------------------------- #

def init_params(key, vocab_size, context_size, embed_dim, n_layers, n_heads):
    del n_heads  # head count only affects reshapes, not parameter shapes
    keys = jax.random.split(key, 4 + n_layers)

    def norm(k, shape, scale=0.02):
        # Matmul operands / embeddings live in bf16 (MXU-native on v5e/v6e/v7x);
        # LN params and biases stay f32 (consumed in f32 VPU epilogues).
        return (scale * jax.random.normal(k, shape)).astype(jnp.bfloat16)

    d = embed_dim
    params = {
        "tok_emb": norm(keys[0], (vocab_size, d)),
        "pos_emb": norm(keys[1], (context_size, d)),
        "fc_w": norm(keys[2], (d, vocab_size)),
        "fc_b": jnp.zeros((vocab_size,), jnp.float32),
        "ln_f_g": jnp.ones((d,), jnp.float32),
        "ln_f_b": jnp.zeros((d,), jnp.float32),
        "layers": [],
    }
    for l in range(n_layers):
        lk = jax.random.split(keys[4 + l], 4)
        params["layers"].append({
            "ln1_g": jnp.ones((d,), jnp.float32), "ln1_b": jnp.zeros((d,), jnp.float32),
            "ln2_g": jnp.ones((d,), jnp.float32), "ln2_b": jnp.zeros((d,), jnp.float32),
            "qkv_w": norm(lk[0], (d, 3 * d)), "qkv_b": jnp.zeros((3 * d,), jnp.float32),
            "proj_w": norm(lk[1], (d, d)),    "proj_b": jnp.zeros((d,), jnp.float32),
            "fc1_w": norm(lk[2], (d, 4 * d)), "fc1_b": jnp.zeros((4 * d,), jnp.float32),
            "fc2_w": norm(lk[3], (4 * d, d)), "fc2_b": jnp.zeros((d,), jnp.float32),
        })
    return params


def transformer_lm_forward(params, x, y=None, *, n_heads, vocab_size):
    B, S = x.shape
    d = params["tok_emb"].shape[1]

    # TODO(synk): embedding gather left to XLA (data-dependent gather, no BlockSpec form used).
    h = jnp.take(params["tok_emb"], x, axis=0) + params["pos_emb"][:S][None, :, :]
    h2 = h.reshape(B * S, d)                                  # bf16 activations throughout

    for lp in params["layers"]:
        # pre-LN causal MHA: LN fused into the QKV matmul, residual fused into proj.
        qkv = ln_linear(h2, lp["ln1_g"], lp["ln1_b"], lp["qkv_w"], lp["qkv_b"])
        attn = causal_attention(qkv, B, S, n_heads)
        h2 = linear(attn, lp["proj_w"], lp["proj_b"], residual=h2)
        # pre-LN MLP: LN+GELU fused into fc1, residual fused into fc2.
        m = ln_linear(h2, lp["ln2_g"], lp["ln2_b"], lp["fc1_w"], lp["fc1_b"],
                      activation="gelu")
        h2 = linear(m, lp["fc2_w"], lp["fc2_b"], residual=h2)

    if y is not None:
        logits_flat, loss = ln_logits_and_loss(
            h2, params["ln_f_g"], params["ln_f_b"], params["fc_w"], params["fc_b"],
            y.reshape(-1))
        return loss, logits_flat.reshape(B, S, vocab_size)

    logits_flat = ln_linear(h2, params["ln_f_g"], params["ln_f_b"],
                            params["fc_w"], params["fc_b"])
    return None, logits_flat.reshape(B, S, vocab_size)


# --------------------------- pure-JAX reference ------------------------------ #

def _reference_forward(params, x, y, *, n_heads):
    params = jax.tree_util.tree_map(lambda a: a.astype(jnp.float32), params)
    B, S = x.shape
    d = params["tok_emb"].shape[1]
    dh = d // n_heads

    def ln(v, g, b):
        mu = v.mean(-1, keepdims=True)
        var = ((v - mu) ** 2).mean(-1, keepdims=True)
        return (v - mu) * jax.lax.rsqrt(var + 1e-5) * g + b

    h = jnp.take(params["tok_emb"], x, axis=0) + params["pos_emb"][:S][None]
    for lp in params["layers"]:
        a = ln(h, lp["ln1_g"], lp["ln1_b"])
        qkv = a @ lp["qkv_w"] + lp["qkv_b"]
        q, k, v = jnp.split(qkv, 3, axis=-1)
        def heads(t): return t.reshape(B, S, n_heads, dh).transpose(0, 2, 1, 3)
        q, k, v = heads(q), heads(k), heads(v)
        s = (q @ k.transpose(0, 1, 3, 2)) / jnp.sqrt(jnp.float32(dh))
        s = jnp.where(jnp.tril(jnp.ones((S, S), bool)), s, -jnp.inf)
        o = (jax.nn.softmax(s, axis=-1) @ v).transpose(0, 2, 1, 3).reshape(B, S, d)
        h = h + o @ lp["proj_w"] + lp["proj_b"]
        m = jax.nn.gelu(ln(h, lp["ln2_g"], lp["ln2_b"]) @ lp["fc1_w"] + lp["fc1_b"],
                        approximate=True)
        h = h + m @ lp["fc2_w"] + lp["fc2_b"]
    h = ln(h, params["ln_f_g"], params["ln_f_b"])
    logits = h @ params["fc_w"] + params["fc_b"]
    logp = jax.nn.log_softmax(logits, axis=-1)
    nll = -jnp.take_along_axis(logp.reshape(-1, logits.shape[-1]),
                               y.reshape(-1, 1), axis=-1)
    return nll.mean(), logits


# ---------------------------------- main ------------------------------------ #

if __name__ == "__main__":
    vocab_size, context_size, embed_dim, n_layers, n_heads = 1024, 32, 256, 2, 2
    B, S = 2, 16

    key = jax.random.PRNGKey(0)
    pkey, xkey, ykey = jax.random.split(key, 3)

    params = init_params(pkey, vocab_size, context_size, embed_dim, n_layers, n_heads)
    x = jax.random.randint(xkey, (B, S), 0, vocab_size, dtype=jnp.int32)
    y = jax.random.randint(ykey, (B, S), 0, vocab_size, dtype=jnp.int32)

    # training path (loss + logits, fused final-LN/logits/xent)
    loss, logits = transformer_lm_forward(params, x, y,
                                          n_heads=n_heads, vocab_size=vocab_size)
    jax.block_until_ready((loss, logits))
    assert logits.shape == (B, S, vocab_size)
    assert loss.shape == ()
    assert bool(jnp.isfinite(loss))

    # inference path (no loss)
    loss_none, logits_inf = transformer_lm_forward(params, x, None,
                                                   n_heads=n_heads, vocab_size=vocab_size)
    jax.block_until_ready(logits_inf)
    assert loss_none is None
    assert bool(jnp.allclose(logits.astype(jnp.float32), logits_inf.astype(jnp.float32),
                             rtol=2e-2, atol=2e-2))

    # correctness vs pure-JAX f32 reference (tolerances account for the bf16 data path)
    ref_loss, ref_logits = _reference_forward(params, x, y, n_heads=n_heads)
    jax.block_until_ready((ref_loss, ref_logits))
    assert bool(jnp.allclose(logits.astype(jnp.float32), ref_logits, rtol=5e-2, atol=2e-2))
    assert bool(jnp.allclose(loss, ref_loss, rtol=2e-2, atol=2e-2))

    print("KERNEL_OK")
</pallas_src>

<mosaic_0001>
module attributes {stable_mosaic.version = 11 : i64} {
  func.func @_ln_linear_kernel(%arg0: i32, %arg1: i32, %arg2: i32, %arg3: memref<32x256xbf16, #tpu.memory_space<vmem>>, %arg4: memref<1x256xf32, #tpu.memory_space<vmem>>, %arg5: memref<1x256xf32, #tpu.memory_space<vmem>>, %arg6: memref<256x384xbf16, #tpu.memory_space<vmem>>, %arg7: memref<1x384xf32, #tpu.memory_space<vmem>>, %arg8: memref<32x384xbf16, #tpu.memory_space<vmem>>, %arg9: memref<1x32x256xbf16, #tpu.memory_space<vmem>>, %arg10: memref<32x384xf32, #tpu.memory_space<vmem>>) attributes {dimension_semantics = [#tpu.dimension_semantics<parallel>, #tpu.dimension_semantics<arbitrary>, #tpu.dimension_semantics<arbitrary>], iteration_bounds = array<i64: 1, 2, 1>, scalar_prefetch = 0 : i64, scratch_operands = 2 : i64, tpu.core_type = #tpu.core_type<tc>, window_params = [{transform_indices = @transform_0, window_bounds = array<i64: 32, 256>}, {pipeline_mode = #tpu.pipeline_mode<synchronous>, transform_indices = @transform_1, window_bounds = array<i64: 1, 256>}, {pipeline_mode = #tpu.pipeline_mode<synchronous>, transform_indices = @transform_2, window_bounds = array<i64: 1, 256>}, {transform_indices = @transform_3, window_bounds = array<i64: 256, 384>}, {transform_indices = @transform_4, window_bounds = array<i64: 1, 384>}, {transform_indices = @transform_5, window_bounds = array<i64: 32, 384>}]} {
    %c0_i32 = arith.constant 0 : i32
    %0 = arith.cmpi eq, %arg1, %c0_i32 : i32
    %c0_i32_0 = arith.constant 0 : i32
    %1 = arith.cmpi eq, %arg2, %c0_i32_0 : i32
    %2 = arith.andi %0, %1 : i1
    %3 = arith.extui %2 : i1 to i32
    %c0_i32_1 = arith.constant 0 : i32
    %4 = arith.cmpi ne, %3, %c0_i32_1 : i32
    scf.if %4 {
      %c0_13 = arith.constant 0 : index
      %c0_14 = arith.constant 0 : index
      %19 = vector.load %arg3[%c0_13, %c0_14] : memref<32x256xbf16, #tpu.memory_space<vmem>>, vector<32x256xbf16>
      %20 = arith.extf %19 : vector<32x256xbf16> to vector<32x256xf32>
      %cst_15 = arith.constant dense<0.000000e+00> : vector<32xf32>
      %21 = vector.multi_reduction <add>, %20, %cst_15 [1] : vector<32x256xf32> to vector<32xf32>
      %22 = vector.shape_cast %21 : vector<32xf32> to vector<32x1xf32>
      %cst_16 = arith.constant 2.560000e+02 : f32
      %23 = vector.broadcast %cst_16 : f32 to vector<32x1xf32>
      %24 = arith.divf %22, %23 : vector<32x1xf32>
      %25 = vector.broadcast %24 : vector<32x1xf32> to vector<32x256xf32>
      %26 = arith.subf %20, %25 : vector<32x256xf32>
      %27 = arith.mulf %26, %26 : vector<32x256xf32>
      %cst_17 = arith.constant dense<0.000000e+00> : vector<32xf32>
      %28 = vector.multi_reduction <add>, %27, %cst_17 [1] : vector<32x256xf32> to vector<32xf32>
      %29 = vector.shape_cast %28 : vector<32xf32> to vector<32x1xf32>
      %cst_18 = arith.constant 2.560000e+02 : f32
      %30 = vector.broadcast %cst_18 : f32 to vector<32x1xf32>
      %31 = arith.divf %29, %30 : vector<32x1xf32>
      %32 = vector.broadcast %24 : vector<32x1xf32> to vector<32x256xf32>
      %33 = arith.subf %20, %32 : vector<32x256xf32>
      %cst_19 = arith.constant 9.99999974E-6 : f32
      %34 = vector.broadcast %cst_19 : f32 to vector<32x1xf32>
      %35 = arith.addf %31, %34 : vector<32x1xf32>
      %36 = math.rsqrt %35 : vector<32x1xf32>
      %37 = vector.broadcast %36 : vector<32x1xf32> to vector<32x256xf32>
      %38 = arith.mulf %33, %37 : vector<32x256xf32>
      %c0_20 = arith.constant 0 : index
      %c0_21 = arith.constant 0 : index
      %39 = vector.load %arg4[%c0_20, %c0_21] : memref<1x256xf32, #tpu.memory_space<vmem>>, vector<1x256xf32>
      %40 = vector.broadcast %39 : vector<1x256xf32> to vector<32x256xf32>
      %41 = arith.mulf %38, %40 : vector<32x256xf32>
      %c0_22 = arith.constant 0 : index
      %c0_23 = arith.constant 0 : index
      %42 = vector.load %arg5[%c0_22, %c0_23] : memref<1x256xf32, #tpu.memory_space<vmem>>, vector<1x256xf32>
      %43 = vector.broadcast %42 : vector<1x256xf32> to vector<32x256xf32>
      %44 = arith.addf %41, %43 : vector<32x256xf32>
      %45 = arith.truncf %44 : vector<32x256xf32> to vector<32x256xbf16>
      %c0_24 = arith.constant 0 : index
      %c0_25 = arith.constant 0 : index
      %c0_26 = arith.constant 0 : index
      %46 = vector.load %arg9[%c0_24, %c0_25, %c0_26] : memref<1x32x256xbf16, #tpu.memory_space<vmem>>, vector<1x32x256xbf16>
      %47 = vector.shape_cast %46 : vector<1x32x256xbf16> to vector<32x256xbf16>
      %48 = vector.shape_cast %45 : vector<32x256xbf16> to vector<1x32x256xbf16>
      tpu.vector_store %arg9[%c0_24, %c0_25, %c0_26], %48 {strides = array<i32>} : memref<1x32x256xbf16, #tpu.memory_space<vmem>>, vector<1x32x256xbf16>,
    } else {
    }
    %c0_i32_2 = arith.constant 0 : i32
    %5 = arith.cmpi eq, %arg2, %c0_i32_2 : i32
    %6 = arith.extui %5 : i1 to i32
    %c0_i32_3 = arith.constant 0 : i32
    %7 = arith.cmpi ne, %6, %c0_i32_3 : i32
    scf.if %7 {
      %cst_13 = arith.constant 0.000000e+00 : f32
      %19 = vector.broadcast %cst_13 : f32 to vector<32x384xf32>
      %c0_14 = arith.constant 0 : index
      %c0_15 = arith.constant 0 : index
      %20 = vector.load %arg10[%c0_14, %c0_15] : memref<32x384xf32, #tpu.memory_space<vmem>>, vector<32x384xf32>
      tpu.vector_store %arg10[%c0_14, %c0_15], %19 {strides = array<i32>} : memref<32x384xf32, #tpu.memory_space<vmem>>, vector<32x384xf32>,
    } else {
    }
    %c0 = arith.constant 0 : index
    %c0_4 = arith.constant 0 : index
    %8 = vector.load %arg10[%c0, %c0_4] : memref<32x384xf32, #tpu.memory_space<vmem>>, vector<32x384xf32>
    %9 = arith.index_cast %arg2 : i32 to index
    %c0_5 = arith.constant 0 : index
    %c0_6 = arith.constant 0 : index
    %10 = vector.load %arg9[%9, %c0_5, %c0_6] : memref<1x32x256xbf16, #tpu.memory_space<vmem>>, vector<1x32x256xbf16>
    %11 = vector.shape_cast %10 : vector<1x32x256xbf16> to vector<32x256xbf16>
    %c0_7 = arith.constant 0 : index
    %c0_8 = arith.constant 0 : index
    %12 = vector.load %arg6[%c0_7, %c0_8] : memref<256x384xbf16, #tpu.memory_space<vmem>>, vector<256x384xbf16>
    %cst = arith.constant dense<0.000000e+00> : vector<32x384xf32>
    %13 = tpu.matmul %11, %12, %cst {dimension_numbers = #tpu.dot_dimension_numbers<[1], [0], [0], [1], [0, 0, 1, 1], [], []>} : vector<32x256xbf16>, vector<256x384xbf16>, vector<32x384xf32> -> vector<32x384xf32>
    %14 = arith.addf %8, %13 : vector<32x384xf32>
    %c0_9 = arith.constant 0 : index
    %c0_10 = arith.constant 0 : index
    %15 = vector.load %arg10[%c0_9, %c0_10] : memref<32x384xf32, #tpu.memory_space<vmem>>, vector<32x384xf32>
    tpu.vector_store %arg10[%c0_9, %c0_10], %14 {strides = array<i32>} : memref<32x384xf32, #tpu.memory_space<vmem>>, vector<32x384xf32>,
    %c0_i32_11 = arith.constant 0 : i32
    %16 = arith.cmpi eq, %arg2, %c0_i32_11 : i32
    %17 = arith.extui %16 : i1 to i32
    %c0_i32_12 = arith.constant 0 : i32
    %18 = arith.cmpi ne, %17, %c0_i32_12 : i32
    scf.if %18 {
      %c0_13 = arith.constant 0 : index
      %c0_14 = arith.constant 0 : index
      %19 = vector.load %arg10[%c0_13, %c0_14] : memref<32x384xf32, #tpu.memory_space<vmem>>, vector<32x384xf32>
      %c0_15 = arith.constant 0 : index
      %c0_16 = arith.constant 0 : index
      %20 = vector.load %arg7[%c0_15, %c0_16] : memref<1x384xf32, #tpu.memory_space<vmem>>, vector<1x384xf32>
      %21 = vector.broadcast %20 : vector<1x384xf32> to vector<32x384xf32>
      %22 = arith.addf %19, %21 : vector<32x384xf32>
      %23 = arith.truncf %22 : vector<32x384xf32> to vector<32x384xbf16>
      %c0_17 = arith.constant 0 : index
      %c0_18 = arith.constant 0 : index
      %24 = vector.load %arg8[%c0_17, %c0_18] : memref<32x384xbf16, #tpu.memory_space<vmem>>, vector<32x384xbf16>
      tpu.vector_store %arg8[%c0_17, %c0_18], %23 {strides = array<i32>} : memref<32x384xbf16, #tpu.memory_space<vmem>>, vector<32x384xbf16>,
    } else {
    }
    return
  }
  func.func @transform_0(%arg0: i32, %arg1: i32, %arg2: i32) -> (i32, i32) {
    %c0_i32 = arith.constant 0 : i32
    %c0_i32_0 = arith.constant 0 : i32
    return %arg0, %c0_i32 : i32, i32
  }
  func.func @transform_1(%arg0: i32, %arg1: i32, %arg2: i32) -> (i32, i32) {
    %c0_i32 = arith.constant 0 : i32
    %c0_i32_0 = arith.constant 0 : i32
    %c0_i32_1 = arith.constant 0 : i32
    return %c0_i32, %c0_i32_0 : i32, i32
  }
  func.func @transform_2(%arg0: i32, %arg1: i32, %arg2: i32) -> (i32, i32) {
    %c0_i32 = arith.constant 0 : i32
    %c0_i32_0 = arith.constant 0 : i32
    %c0_i32_1 = arith.constant 0 : i32
    return %c0_i32, %c0_i32_0 : i32, i32
  }
  func.func @transform_3(%arg0: i32, %arg1: i32, %arg2: i32) -> (i32, i32) {
    %c0_i32 = arith.constant 0 : i32
    return %arg2, %arg1 : i32, i32
  }
  func.func @transform_4(%arg0: i32, %arg1: i32, %arg2: i32) -> (i32, i32) {
    %c0_i32 = arith.constant 0 : i32
    %c0_i32_0 = arith.constant 0 : i32
    return %c0_i32, %arg1 : i32, i32
  }
  func.func @transform_5(%arg0: i32, %arg1: i32, %arg2: i32) -> (i32, i32) {
    %c0_i32 = arith.constant 0 : i32
    return %arg0, %arg1 : i32, i32
  }
}

</mosaic_0001>

<bundles_post_ra>
// kernel: tpu_custom_call.1
= control target key start
LH: loop header
LB: loop body
LE: loop exit
PB: predicated region body
PF: predicated region fallthrough
CT: control target
= control target key end

     0   :  { %s2304_s0 = inlined_call_operand.hbm [shape: bf16[32,256], index: 0, kind: input, shape index: {}]   ;;  %s2305_s1 = inlined_call_operand.hbm [shape: f32[1,256], index: 1, kind: input, shape index: {}]   ;;  %s2306_s2 = inlined_call_operand.hbm [shape: f32[1,256], index: 2, kind: input, shape index: {}]   ;;  %s2307_s3 = inlined_call_operand.hbm [shape: bf16[256,768], index: 3, kind: input, shape index: {}]   ;;  %s2308_s4 = inlined_call_operand.hbm [shape: f32[1,768], index: 4, kind: input, shape index: {}]   ;;  %s2309_s5 = inlined_call_operand.hbm [shape: bf16[32,768], index: 5, kind: output, shape index: {}]  }
   0x1   :  { %2316 = sst [smem:[#allocation23_spill]] %s2304_s0 }
   0x2   :  { %2317 = sst [smem:[#allocation24_spill]] %s2305_s1 }
   0x3   :  { %2318 = sst [smem:[#allocation25_spill]] %s2307_s3 }
   0x4   :  { %10 = vsyncpa [#allocation5], 0 }
   0x5   :  { %11 = vsyncpa [#allocation8], 0 }
   0x6   :  { %12 = vsyncpa [#allocation11], 0 }
   0x7   :  { %14 = vsyncpa [#allocation11 + $0x1], 0 }
   0x8   :  { %15 = vsyncpa [#allocation6], 0 }
   0x9   :  { %17 = vsyncpa [#allocation6 + $0x1], 0  ;;  %s1957_s18 = smov 0   ;;  %s1959_s19 = smov 0  }
   0xa   :  { %s1961_s20 = smov 0   ;;  %s1963_s21 = smov 0  }
   0xb   :  { %s1965_s22 = smov 0   ;;  %s1967_s23 = smov 0  }
   0xc LB: > { %2319 = sst [smem:[#allocation18_spill]] %s1893_s18  ;;  %s1988_s24 = sadd.s32 4294967295, %s1913_s23   ;;  %s1913_s23 = sphi %s1967_s23, %s23_s23   ;;  %s1909_s22 = sphi %s1965_s22, %s2344_s22   ;;  %s1905_s21 = sphi %s1963_s21, %s2343_s21   ;;  %s1901_s20 = sphi %s1961_s20, %s2342_s20   ;;  %s1897_s19 = sphi %s1959_s19, %s2341_s19   ;;  %s1893_s18 = sphi %s1957_s18, %s2340_s18  }
   0xd   : > { %2320 = sst [smem:[#allocation19_spill]] %s1913_s23  ;;  %s1257_s25 = sadd.s32 4294967294, %s1913_s23  }
   0xe   : > { %s119_s26 = sadd.s32 1, %s1901_s20  ;;  %p126_p0 = scmp.ne.s32.totalorder %s1901_s20, %s1897_s19 }
   0xf   : > { %p127_p1 = scmp.eq.s32.totalorder %s1913_s23, 0  ;;  %p132_p2 = scmp.ne.s32.totalorder %s1897_s19, %s1893_s18 }
  0x10   : > { %p133_p3 = scmp.eq.s32.totalorder %s1988_s24, 0  ;;  %p184_p4 = scmp.eq.s32.totalorder %s1988_s24, 1 }
  0x11   : > { %p1999_p5 = por %p127_p1, %p126_p0  ;;  %p190_p6 = scmp.eq.s32.totalorder %s1257_s25, 1 }
  0x12   : > { %p2005_p7 = por %p133_p3, %p132_p2  ;;  %p2009_p8 = por %p184_p4, %p126_p0 }
  0x13   : > { %p2013_p9 = por %p190_p6, %p132_p2  ;;  %p1258_p10 = scmp.ge.s32.totalorder %s1913_s23, 1 }
  0x14   : > { %p197_p11 = scmp.lt.s32.totalorder %s1913_s23, 3  ;;  %s2326_s1 = sld [smem:[#allocation24_spill]] }
  0x15   : > { %s2324_s30 = scalar_select %p2013_p9, 1, 0 }
  0x16   : > { %p2022_p12 = pnand %p1258_p10, %p197_p11  ;;  %s1915_s10 = smov [#allocation7]  }
  0x17   : > { %2325 = sst [smem:[#allocation20_spill]] %s2324_s30  ;;  %s229_s11 = sshll.u32 %s1915_s10, 4  ;;  %s230_s11 = int_to_ptr.vmem [resolvable:$true] %s229_s11 }
  0x18   : > { %p1262_p13 = scmp.ge.s32.totalorder %s1913_s23, 2  ;;  %p1574_p0 = pneg %p2022_p12 }
  0x19   : > { %p1598_p1 = scmp.lt.s32.totalorder %s1913_s23, 2  ;;  %s38_s14 = sadd.s32 1, %s1909_s22 }
  0x1a   : > { %s227_s8 = sshll.u32 %s2326_s1, 4  ;;  %p2032_p2 = pnand %p1574_p0, %p133_p3  ;;  %s228_s8 = int_to_ptr.hbm [resolvable:$true] %s227_s8 }
  0x1b   : > { %p2038_p4 = pnand %p1598_p1, %p1999_p5  ;;  %p40_p6 = scmp.ge.s32.totalorder %s38_s14, 2 }
  0x1c   : > { %1580 = dma.hbm_to_vmem [thread:$0]  (!%p2032_p2), %s228_s8, 32, %s230_s11, [#allocation8]  }
  0x1d   : > { %s252_s15 = sand.u32 1, %s1913_s23   ;;  %s2346_s14 = smov (%p40_p6, %s38_s14), 0 }
  0x1e   : > { %2330 = sst [smem:[#allocation21_spill]] %s2346_s14  ;;  %s2315_s16 = sand.u32 1, %s1901_s20  }
  0x1f   : > { %s115_s17 = ssub.s32 %s1909_s22, %s2346_s14  ;;  %s1551_s25 = smul.u32 384, %s2315_s16 }
  0x20   : > { %p117_p10 = scmp.eq.s32.totalorder %s115_s17, 0  ;;  %s1480_s27 = smul.u32 12, %s1909_s22 }
  0x21   : > { %s2332_s3 = sld [smem:[#allocation25_spill]]  ;;  %s256_s30 = scalar_lea.vmem [#allocation10], %s1551_s25 }
  0x22   : > { %s2057_s6 = scalar_select %p117_p10, %s1901_s20, %s119_s26  }
  0x23   : > { %s267_s8 = sshll.u32 %s256_s30, 4  ;;  %s253_s23 = scalar_lea.sflag [#allocation11], %s252_s15  ;;  %s268_s8 = int_to_ptr.vmem [resolvable:$true] %s267_s8 }
  0x24   : > { %2331 = sst [smem:[#allocation22_spill]] %s2057_s6  ;;  %s1916_s18 = smov 384  }
  0x25   : > { %s1917_s14 = smov 192   ;;  %s1918_s16 = smov 12  }
  0x26   : > { %s2333_s0 = sld [smem:[#allocation23_spill]]  ;;  %s1919_s25 = smov [#allocation4]  }
  0x27   : > { %s264_s1 = scalar_lea.hbm %s2332_s3, %s1480_s27  ;;  %s214_s30 = sshll.u32 %s1919_s25, 4  ;;  %s215_s30 = int_to_ptr.vmem [resolvable:$true] %s214_s30 }
  0x28   : > { %s265_s11 = sshll.u32 %s264_s1, 4  ;;  %s1920_s1 = smov 128   ;;  %s266_s11 = int_to_ptr.hbm [resolvable:$true] %s265_s11 }
  0x29   : > { %1587 = dma.hbm_to_vmem [thread:$0]  (!%p2038_p4), %s266_s11, 6144, %s268_s8, %s253_s23, %s1916_s18, %s1917_s14, %s1918_s16  }
  0x2a   : > { %s1921_s27 = smov 8   ;;  %s239_s3 = sshll.u32 %s2306_s2, 4  ;;  %s240_s3 = int_to_ptr.hbm [resolvable:$true] %s239_s3 }
  0x2b   : > { %s1922_s18 = smov [#allocation9]   ;;  %s2334_s16 = sand.u32 1, %s1901_s20  }
  0x2c   : > { %s212_s7 = sshll.u32 %s2333_s0, 4  ;;  %s241_s14 = sshll.u32 %s1922_s18, 4  ;;  %s213_s7 = int_to_ptr.hbm [resolvable:$true] %s212_s7  ;;  %s242_s14 = int_to_ptr.vmem [resolvable:$true] %s241_s14 }
  0x2d   : > { %1577 = dma.hbm_to_vmem [thread:$0]  (!%p2032_p2), %s213_s7, 512, %s215_s30, [#allocation5], %s1920_s1, %s1920_s1, %s1921_s27  }
  0x2e   : > { %s1552_s8 = smul.u32 3, %s2334_s16 }
  0x2f   : > { %1583 = dma.hbm_to_vmem [thread:$0]  (!%p2032_p2), %s240_s3, 32, %s242_s14, [#allocation8]  }
  0x30   : > { %s282_s11 = smul.u32 3, %s1909_s22  ;;  %s281_s26 = scalar_lea.vmem [#allocation12], %s1552_s8 }
  0x31   : > { %s289_s17 = sshll.u32 %s281_s26, 4  ;;  %298 = sbr.rel (%p2022_p12) target bundleno = 567 (0x237), region = 40  ;;  %s290_s17 = int_to_ptr.vmem [resolvable:$true] %s289_s17 }
  0x32   : > { %s285_s6 = scalar_lea.hbm %s2308_s4, %s282_s11 }
  0x33   : > { %s287_s7 = sshll.u32 %s285_s6, 4  ;;  %s288_s7 = int_to_ptr.hbm [resolvable:$true] %s287_s7 }
  0x34   : > { %1590 = dma.hbm_to_vmem [thread:$0]  (!%p2038_p4), %s288_s7, 48, %s290_s17, %s253_s23  }
  0x36   : > { %1876 = dma.done.wait (%p133_p3), [#allocation5], 512  }
  0x37   : > { %1878 = vsyncadd (%p133_p3), [#allocation5], 4294966784 }
  0x38   : > { %1880 = dma.done.wait (%p133_p3), [#allocation8], 64  }
  0x39   : > { %1882 = vsyncadd (%p133_p3), [#allocation8], 4294967232  ;;  %s315_s0 = sand.u32 1, %s1988_s24   ;;  %s2094_s3 = sand.u32 1, %s1897_s19  }
  0x3a   : > { %s1553_s23 = smul.u32 384, %s2094_s3  ;;  %s316_s9 = scalar_lea.sflag [#allocation11], %s315_s0 }
  0x3c   : > { %s2097_s12 = scalar_lea.vmem [#allocation10], %s1553_s23 }
  0x3d   : > { %1884 = dma.done.wait (%p2005_p7), %s316_s9, 6192  }
  0x3e   : > { %1886 = vsyncadd (%p2005_p7), %s316_s9, 4294961104  ;;  %s1554_s13 = smul.u32 3, %s2094_s3  ;;  %p368_p3 = scmp.eq.s32.totalorder %s1905_s21, 0 }
  0x3f   : > { %s1555_s6 = smul.u32 48, %s2094_s3  ;;  %v376_v0 = vld [vmem:[#allocation4 + $0x10] sm:$0xff] (%p368_p3)  ;;  %v374_v1 = vld [vmem:[#allocation4] sm:$0xff] (%p368_p3)  ;;  %v377_v6 = vld [vmem:[#allocation4 + $0x18] sm:$0xff] (%p368_p3)  ;;  %v1923_v16 = vmov (%p368_p3), 256.0  }
  0x40   : > { %s2106_s30 = scalar_lea.vmem [#allocation12], %s1554_s13  ;;  %373 = sbr.rel (!%p368_p3) target bundleno = 348 (0x15c), region = 64  ;;  %v382_v2 = vunpack.c.l.bf16 (%p368_p3), %v376_v0  ;;  %v383_v3 = vunpack.c.h.bf16 (%p368_p3), %v376_v0  ;;  %v378_v4 = vunpack.c.l.bf16 (%p368_p3), %v374_v1  ;;  %v379_v5 = vunpack.c.h.bf16 (%p368_p3), %v374_v1  ;;  %v375_v7 = vld [vmem:[#allocation4 + $0x8] sm:$0xff] (%p368_p3) }
  0x41   : > { %s2108_s24 = scalar_lea.vmem [#allocation13], %s1555_s6  ;;  %v384_v10 = vunpack.c.l.bf16 (%p368_p3), %v377_v6  ;;  %v385_v11 = vunpack.c.h.bf16 (%p368_p3), %v377_v6  ;;  %v380_v12 = vunpack.c.l.bf16 (%p368_p3), %v375_v7  ;;  %v381_v13 = vunpack.c.h.bf16 (%p368_p3), %v375_v7  ;;  %v493_v6 = vld [vmem:[#allocation7] sm:$0x3] (%p368_p3) }
  0x42   : > { %v392_v8 = vadd.f32 (%p368_p3), %v383_v3, %v382_v2  ;;  %v386_v9 = vadd.f32 (%p368_p3), %v379_v5, %v378_v4  ;;  %1663 = vrcp.f32 (%p368_p3), %v1923_v16  ;;  %v496_v16 = vperm.slane (%p368_p3), %v493_v6, 1 }
  0x43   : > { %v395_v14 = vadd.f32 (%p368_p3), %v385_v11, %v384_v10  ;;  %v389_v15 = vadd.f32 (%p368_p3), %v381_v13, %v380_v12 }
  0x44   : > { %393 = vadd.xlane.f32.xlu1 (%p368_p3), %v392_v8  ;;  %387 = vadd.xlane.f32.xlu0 (%p368_p3), %v386_v9 }
  0x48   : > { %v1664_v17 = vpop.eup %1663 }
  0x49   : > { %v399_v18 = vmul.f32 256.0, %v1664_v17  ;;  %vm403_vm0 = vweird.f32 %v1664_v17 }
  0x4b   : > { %v400_v19 = vsub.f32 1.0, %v399_v18 }
  0x4c   : > { %396 = vadd.xlane.f32.xlu1 %v395_v14  ;;  %390 = vadd.xlane.f32.xlu0 %v389_v15 }
  0x4d   : > { %v401_v20 = vmul.f32 %v1664_v17, %v400_v19 }
  0x4f   : > { %v402_v21 = vadd.f32 %v1664_v17, %v401_v20 }
  0x51   : > { %v404_v22 = vsel %vm403_vm0, %v1664_v17, %v402_v21 }
  0xb7   : > { %v394_v23 = vpop.xlane.xlu1 %393  ;;  %v388_v24 = vpop.xlane.xlu0 %387 }
  0xb8   : > { %v407_v25 = vmul.f32 %v404_v22, %v394_v23  ;;  %v405_v26 = vmul.f32 %v404_v22, %v388_v24 }
  0xba   : > { %v2110_v27 = vsub.f32 %v382_v2, %v407_v25  ;;  %v2112_v28 = vsub.f32 %v383_v3, %v407_v25  ;;  %v2114_v29 = vsub.f32 %v378_v4, %v405_v26  ;;  %v2116_v30 = vsub.f32 %v379_v5, %v405_v26 }
  0xbc   : > { %v421_v31 = vmul.f32 %v2110_v27, %v2110_v27  ;;  %v422_v32 = vmul.f32 %v2112_v28, %v2112_v28  ;;  %v417_v33 = vmul.f32 %v2114_v29, %v2114_v29  ;;  %v418_v34 = vmul.f32 %v2116_v30, %v2116_v30 }
  0xbe   : > { %v431_v35 = vadd.f32 %v422_v32, %v421_v31  ;;  %v425_v36 = vadd.f32 %v418_v34, %v417_v33 }
  0xbf   : > { %v397_v37 = vpop.xlane.xlu1 %396  ;;  %v391_v38 = vpop.xlane.xlu0 %390 }
  0xc0   : > { %v408_v39 = vmul.f32 %v404_v22, %v397_v37  ;;  %v406_v40 = vmul.f32 %v404_v22, %v391_v38  ;;  %432 = vadd.xlane.f32.xlu0 %v431_v35  ;;  %426 = vadd.xlane.f32.xlu2 %v425_v36 }
  0xc2   : > { %v2126_v41 = vsub.f32 %v384_v10, %v408_v39  ;;  %v2128_v42 = vsub.f32 %v385_v11, %v408_v39  ;;  %v2130_v43 = vsub.f32 %v380_v12, %v406_v40  ;;  %v2132_v44 = vsub.f32 %v381_v13, %v406_v40  ;;  %v507_v10 = vld [vmem:[#allocation9] sm:$0x3] }
  0xc3   : > { %v495_v13 = vperm.slane %v493_v6, 0  ;;  %v509_v19 = vperm.slane %v507_v10, 0  ;;  %v510_v20 = vperm.slane %v507_v10, 1 }
  0xc4   : > { %v423_v45 = vmul.f32 %v2126_v41, %v2126_v41  ;;  %v424_v46 = vmul.f32 %v2128_v42, %v2128_v42  ;;  %v419_v47 = vmul.f32 %v2130_v43, %v2130_v43  ;;  %v420_v48 = vmul.f32 %v2132_v44, %v2132_v44 }
  0xc6   : > { %v434_v49 = vadd.f32 %v424_v46, %v423_v45  ;;  %v428_v50 = vadd.f32 %v420_v48, %v419_v47 }
  0xc8   : > { %435 = vadd.xlane.f32.xlu1 %v434_v49  ;;  %429 = vadd.xlane.f32.xlu2 %v428_v50 }
 0x133   : > { %v427_v51 = vpop.xlane.xlu2 %426  ;;  %v433_v52 = vpop.xlane.xlu0 %432 }
 0x134   : > { %v437_v53 = vmul.f32 %v427_v51, %v404_v22  ;;  %v439_v54 = vmul.f32 %v433_v52, %v404_v22 }
 0x136   : > { %v441_v55 = vadd.f32 1e-05, %v437_v53  ;;  %v443_v56 = vadd.f32 1e-05, %v439_v54 }
 0x138   : > { %1665 = vrsqrt.f32 %v441_v55  ;;  %vm451_vm3 = vweird.f32 %v441_v55  ;;  %vm471_vm5 = vweird.f32 %v443_v56 }
 0x139   : > { %1667 = vrsqrt.f32 %v443_v56 }
 0x13b   : > { %v436_v57 = vpop.xlane.xlu1 %435  ;;  %v430_v58 = vpop.xlane.xlu2 %429 }
 0x13c   : > { %v440_v59 = vmul.f32 %v436_v57, %v404_v22  ;;  %v438_v60 = vmul.f32 %v430_v58, %v404_v22 }
 0x13e   : > { %v1666_v61 = vpop.eup %1665  ;;  %v444_v62 = vadd.f32 1e-05, %v440_v59  ;;  %v442_v63 = vadd.f32 1e-05, %v438_v60 }
 0x13f   : > { %v1668_v0 = vpop.eup %1667  ;;  %v446_v1 = vmul.f32 %v1666_v61, %v441_v55  ;;  %vm452_vm1 = vweird.f32 %v1666_v61 }
 0x140   : > { %v466_v2 = vmul.f32 %v1668_v0, %v443_v56  ;;  %1669 = vrsqrt.f32 %v444_v62  ;;  %vm472_vm2 = vweird.f32 %v1668_v0  ;;  %vm453_vm4 = vmor %vm451_vm3, %vm452_vm1  ;;  %vm481_vm9 = vweird.f32 %v444_v62 }
 0x141   : > { %v447_v3 = vmul.f32 %v1666_v61, %v446_v1  ;;  %1671 = vrsqrt.f32 %v442_v63  ;;  %vm473_vm6 = vmor %vm471_vm5, %vm472_vm2  ;;  %vm461_vm11 = vweird.f32 %v442_v63 }
 0x142   : > { %v467_v4 = vmul.f32 %v1668_v0, %v466_v2 }
 0x143   : > { %v448_v5 = vmul.f32 0.5, %v447_v3 }
 0x144   : > { %v468_v7 = vmul.f32 0.5, %v467_v4 }
 0x145   : > { %v449_v8 = vsub.f32 1.5, %v448_v5 }
 0x146   : > { %v1670_v9 = vpop.eup %1669  ;;  %v469_v11 = vsub.f32 1.5, %v468_v7 }
 0x147   : > { %v1672_v12 = vpop.eup %1671  ;;  %v450_v14 = vmul.f32 %v1666_v61, %v449_v8  ;;  %v476_v15 = vmul.f32 %v1670_v9, %v444_v62  ;;  %vm482_vm7 = vweird.f32 %v1670_v9 }
 0x148   : > { %v470_v17 = vmul.f32 %v1668_v0, %v469_v11  ;;  %v456_v18 = vmul.f32 %v1672_v12, %v442_v63  ;;  %vm462_vm8 = vweird.f32 %v1672_v12  ;;  %vm483_vm10 = vmor %vm481_vm9, %vm482_vm7 }
 0x149   : > { %v454_v21 = vsel %vm453_vm4, %v1666_v61, %v450_v14  ;;  %v477_v22 = vmul.f32 %v1670_v9, %v476_v15  ;;  %vm463_vm12 = vmor %vm461_vm11, %vm462_vm8 }
 0x14a   : > { %v485_v23 = vmul.f32 %v454_v21, %v2114_v29  ;;  %v486_v24 = vmul.f32 %v454_v21, %v2116_v30  ;;  %v474_v25 = vsel %vm473_vm6, %v1668_v0, %v470_v17  ;;  %v457_v26 = vmul.f32 %v1672_v12, %v456_v18 }
 0x14b   : > { %v489_v31 = vmul.f32 %v474_v25, %v2110_v27  ;;  %v490_v32 = vmul.f32 %v474_v25, %v2112_v28  ;;  %v478_v33 = vmul.f32 0.5, %v477_v22 }
 0x14c   : > { %v499_v34 = vmul.f32 %v495_v13, %v485_v23  ;;  %v500_v35 = vmul.f32 %v496_v16, %v486_v24  ;;  %v458_v36 = vmul.f32 0.5, %v457_v26 }
 0x14d   : > { %v503_v37 = vmul.f32 %v495_v13, %v489_v31  ;;  %v504_v38 = vmul.f32 %v496_v16, %v490_v32  ;;  %v479_v39 = vsub.f32 1.5, %v478_v33 }
 0x14e   : > { %v513_v40 = vadd.f32 %v509_v19, %v499_v34  ;;  %v514_v45 = vadd.f32 %v510_v20, %v500_v35  ;;  %v459_v46 = vsub.f32 1.5, %v458_v36 }
 0x14f   : > { %v517_v29 = vadd.f32 %v509_v19, %v503_v37  ;;  %v518_v30 = vadd.f32 %v510_v20, %v504_v38  ;;  %v480_v47 = vmul.f32 %v1670_v9, %v479_v39 }
 0x150   : > { %v521_v48 = vpack.c.bf16 %v514_v45, %v513_v40  ;;  %v460_v27 = vmul.f32 %v1672_v12, %v459_v46 }
 0x151   : > { %v523_v28 = vpack.c.bf16 %v518_v30, %v517_v29  ;;  %v484_v49 = vsel %vm483_vm10, %v1670_v9, %v480_v47 }
 0x152   : > { %525 = vst [vmem:[#allocation2] sm:$0xff] %v521_v48  ;;  %v491_v50 = vmul.f32 %v484_v49, %v2126_v41  ;;  %v492_v51 = vmul.f32 %v484_v49, %v2128_v42  ;;  %v464_v52 = vsel %vm463_vm12, %v1672_v12, %v460_v27 }
 0x153   : > { %527 = vst [vmem:[#allocation2 + $0x10] sm:$0xff] %v523_v28  ;;  %v487_v53 = vmul.f32 %v464_v52, %v2130_v43  ;;  %v488_v54 = vmul.f32 %v464_v52, %v2132_v44 }
 0x154   : > { %v505_v55 = vmul.f32 %v495_v13, %v491_v50  ;;  %v506_v56 = vmul.f32 %v496_v16, %v492_v51 }
 0x155   : > { %v501_v57 = vmul.f32 %v495_v13, %v487_v53  ;;  %v502_v58 = vmul.f32 %v496_v16, %v488_v54 }
 0x156   : > { %v519_v59 = vadd.f32 %v509_v19, %v505_v55  ;;  %v520_v60 = vadd.f32 %v510_v20, %v506_v56 }
 0x157   : > { %v515_v61 = vadd.f32 %v509_v19, %v501_v57  ;;  %v516_v62 = vadd.f32 %v510_v20, %v502_v58 }
 0x158   : > { %v524_v63 = vpack.c.bf16 %v520_v60, %v519_v59 }
 0x159   : > { %v522_v0 = vpack.c.bf16 %v516_v62, %v515_v61 }
 0x15a   : > { %528 = vst [vmem:[#allocation2 + $0x18] sm:$0xff] %v524_v63 }
 0x15b   : > { %526 = vst [vmem:[#allocation2 + $0x8] sm:$0xff] %v522_v0 }
 0x15c PF: > { %v1371_v41 = vld [vmem:[%s2097_s12 + $0xa8] sm:$0xf]  ;;  %v1508_v42 = vld [vmem:[%s2097_s12 + $0xb0] sm:$0xf0]  ;;  %v1507_v2 = vld [vmem:[%s2097_s12 + $0xac] sm:$0xf] }
 0x15d   : > { %v1467_v43 = vld [vmem:[%s2097_s12 + $0x168] sm:$0xf]  ;;  %v1372_v44 = vor.u32 %v1508_v42, %v1371_v41  ;;  %v1532_v1 = vld [vmem:[%s2097_s12 + $0x170] sm:$0xf0]  ;;  %v1373_v3 = vld [vmem:[%s2097_s12 + $0xb4] sm:$0xf0] }
 0x15e   : > { %v1468_v4 = vor.u32 %v1532_v1, %v1467_v43  ;;  %v1376_v5 = vor.u32 %v1507_v2, %v1373_v3  ;;  %v1531_v6 = vld [vmem:[%s2097_s12 + $0x16c] sm:$0xf]  ;;  %v1469_v7 = vld [vmem:[%s2097_s12 + $0x174] sm:$0xf0]  ;;  %v1359_v8 = vld [vmem:[%s2097_s12 + $0x90] sm:$0xf] }
 0x15f   : > { %903 = vmatpush.bf16.msra.mxu0 %v1372_v44  ;;  %v1472_v9 = vor.u32 %v1531_v6, %v1469_v7  ;;  %v1505_v10 = vld [vmem:[%s2097_s12 + $0x98] sm:$0xf0]  ;;  %v1455_v11 = vld [vmem:[%s2097_s12 + $0x150] sm:$0xf]  ;;  %v1504_v15 = vld [vmem:[%s2097_s12 + $0x94] sm:$0xf] }
 0x160   : > { %v1529_v12 = vld [vmem:[%s2097_s12 + $0x158] sm:$0xf0]  ;;  %922 = vmatpush.bf16.msra.mxu1 %v1468_v4  ;;  %941 = vmatpush.bf16.msra.mxu2 %v1376_v5  ;;  %v1360_v13 = vor.u32 %v1505_v10, %v1359_v8  ;;  %v1361_v16 = vld [vmem:[%s2097_s12 + $0x9c] sm:$0xf0]  ;;  %v1528_v17 = vld [vmem:[%s2097_s12 + $0x154] sm:$0xf] }
 0x161   : > { %v1456_v14 = vor.u32 %v1529_v12, %v1455_v11  ;;  %960 = vmatpush.bf16.msra.mxu3 %v1472_v9  ;;  %v1364_v18 = vor.u32 %v1504_v15, %v1361_v16  ;;  %v1457_v19 = vld [vmem:[%s2097_s12 + $0x15c] sm:$0xf0]  ;;  %v1347_v20 = vld [vmem:[%s2097_s12 + $0x78] sm:$0xf]  ;;  %v1502_v21 = vld [vmem:[%s2097_s12 + $0x80] sm:$0xf0] }
 0x162   : > { %v1460_v22 = vor.u32 %v1528_v17, %v1457_v19  ;;  %v1443_v23 = vld [vmem:[%s2097_s12 + $0x138] sm:$0xf]  ;;  %v1526_v24 = vld [vmem:[%s2097_s12 + $0x140] sm:$0xf0]  ;;  %v1501_v25 = vld [vmem:[%s2097_s12 + $0x7c] sm:$0xf]  ;;  %v1348_v26 = vor.u32 %v1502_v21, %v1347_v20 }
 0x163   : > { %904 = vmatpush.bf16.msra.mxu0 %v1360_v13  ;;  %v1349_v31 = vld [vmem:[%s2097_s12 + $0x84] sm:$0xf0]  ;;  %v1525_v32 = vld [vmem:[%s2097_s12 + $0x13c] sm:$0xf]  ;;  %v1444_v34 = vor.u32 %v1526_v24, %v1443_v23  ;;  %v1335_v36 = vld [vmem:[%s2097_s12 + $0x60] sm:$0xf] }
 0x164   : > { %v1445_v33 = vld [vmem:[%s2097_s12 + $0x144] sm:$0xf0]  ;;  %923 = vmatpush.bf16.msra.mxu1 %v1456_v14  ;;  %942 = vmatpush.bf16.msra.mxu2 %v1364_v18  ;;  %v1352_v35 = vor.u32 %v1501_v25, %v1349_v31  ;;  %v1499_v37 = vld [vmem:[%s2097_s12 + $0x68] sm:$0xf0]  ;;  %v1431_v38 = vld [vmem:[%s2097_s12 + $0x120] sm:$0xf] }
 0x165   : > { %961 = vmatpush.bf16.msra.mxu3 %v1460_v22  ;;  %v1448_v39 = vor.u32 %v1525_v32, %v1445_v33  ;;  %v1523_v40 = vld [vmem:[%s2097_s12 + $0x128] sm:$0xf0]  ;;  %v1498_v45 = vld [vmem:[%s2097_s12 + $0x64] sm:$0xf]  ;;  %v1337_v46 = vld [vmem:[%s2097_s12 + $0x6c] sm:$0xf0]  ;;  %v1336_v47 = vor.u32 %v1499_v37, %v1335_v36 }
 0x166   : > { %v1522_v29 = vld [vmem:[%s2097_s12 + $0x124] sm:$0xf]  ;;  %v1433_v30 = vld [vmem:[%s2097_s12 + $0x12c] sm:$0xf0]  ;;  %v1432_v48 = vor.u32 %v1523_v40, %v1431_v38  ;;  %v1340_v27 = vor.u32 %v1498_v45, %v1337_v46  ;;  %v1323_v28 = vld [vmem:[%s2097_s12 + $0x48] sm:$0xf] }
 0x167   : > { %905 = vmatpush.bf16.msra.mxu0 %v1348_v26  ;;  %v1496_v49 = vld [vmem:[%s2097_s12 + $0x50] sm:$0xf0]  ;;  %v1419_v50 = vld [vmem:[%s2097_s12 + $0x108] sm:$0xf]  ;;  %v1436_v51 = vor.u32 %v1522_v29, %v1433_v30  ;;  %v1495_v53 = vld [vmem:[%s2097_s12 + $0x4c] sm:$0xf] }
 0x168   : > { %924 = vmatpush.bf16.msra.mxu1 %v1444_v34  ;;  %943 = vmatpush.bf16.msra.mxu2 %v1352_v35  ;;  %v1520_v52 = vld [vmem:[%s2097_s12 + $0x110] sm:$0xf0]  ;;  %v1325_v54 = vld [vmem:[%s2097_s12 + $0x54] sm:$0xf0]  ;;  %v1519_v55 = vld [vmem:[%s2097_s12 + $0x10c] sm:$0xf]  ;;  %v1324_v57 = vor.u32 %v1496_v49, %v1323_v28 }
 0x169   : > { %962 = vmatpush.bf16.msra.mxu3 %v1448_v39  ;;  %v1421_v56 = vld [vmem:[%s2097_s12 + $0x114] sm:$0xf0]  ;;  %v1420_v58 = vor.u32 %v1520_v52, %v1419_v50  ;;  %v1328_v59 = vor.u32 %v1495_v53, %v1325_v54  ;;  %v1311_v60 = vld [vmem:[%s2097_s12 + $0x30] sm:$0xf]  ;;  %v1493_v61 = vld [vmem:[%s2097_s12 + $0x38] sm:$0xf0] }
 0x16a   : > { %v1407_v62 = vld [vmem:[%s2097_s12 + $0xf0] sm:$0xf]  ;;  %v1424_v63 = vor.u32 %v1519_v55, %v1421_v56  ;;  %v1517_v0 = vld [vmem:[%s2097_s12 + $0xf8] sm:$0xf0]  ;;  %v1492_v41 = vld [vmem:[%s2097_s12 + $0x34] sm:$0xf]  ;;  %v1312_v1 = vor.u32 %v1493_v61, %v1311_v60 }
 0x16b   : > { %906 = vmatpush.bf16.msra.mxu0 %v1336_v47  ;;  %v1313_v42 = vld [vmem:[%s2097_s12 + $0x3c] sm:$0xf0]  ;;  %v1516_v43 = vld [vmem:[%s2097_s12 + $0xf4] sm:$0xf]  ;;  %v1408_v2 = vor.u32 %v1517_v0, %v1407_v62  ;;  %v1299_v4 = vld [vmem:[%s2097_s12 + $0x18] sm:$0xf] }
 0x16c   : > { %925 = vmatpush.bf16.msra.mxu1 %v1432_v48  ;;  %944 = vmatpush.bf16.msra.mxu2 %v1340_v27  ;;  %v1409_v44 = vld [vmem:[%s2097_s12 + $0xfc] sm:$0xf0]  ;;  %v1316_v3 = vor.u32 %v1492_v41, %v1313_v42  ;;  %v1490_v5 = vld [vmem:[%s2097_s12 + $0x20] sm:$0xf0]  ;;  %v1395_v6 = vld [vmem:[%s2097_s12 + $0xd8] sm:$0xf] }
 0x16d   : > { %963 = vmatpush.bf16.msra.mxu3 %v1436_v51  ;;  %v1412_v7 = vor.u32 %v1516_v43, %v1409_v44  ;;  %v1514_v8 = vld [vmem:[%s2097_s12 + $0xe0] sm:$0xf0]  ;;  %v1489_v9 = vld [vmem:[%s2097_s12 + $0x1c] sm:$0xf]  ;;  %v1301_v10 = vld [vmem:[%s2097_s12 + $0x24] sm:$0xf0]  ;;  %v1300_v13 = vor.u32 %v1490_v5, %v1299_v4 }
 0x16e   : > { %v1513_v11 = vld [vmem:[%s2097_s12 + $0xdc] sm:$0xf]  ;;  %v1397_v12 = vld [vmem:[%s2097_s12 + $0xe4] sm:$0xf0]  ;;  %v1287_v14 = vld [vmem:[%s2097_s12] sm:$0xf]  ;;  %v1396_v16 = vor.u32 %v1514_v8, %v1395_v6  ;;  %v1304_v17 = vor.u32 %v1489_v9, %v1301_v10 }
 0x16f   : > { %907 = vmatpush.bf16.msra.mxu0 %v1324_v57  ;;  %v1487_v15 = vld [vmem:[%s2097_s12 + $0x8] sm:$0xf0]  ;;  %v1383_v18 = vld [vmem:[%s2097_s12 + $0xc0] sm:$0xf]  ;;  %v1486_v20 = vld [vmem:[%s2097_s12 + $0x4] sm:$0xf]  ;;  %v1400_v21 = vor.u32 %v1513_v11, %v1397_v12 }
 0x170   : > { %926 = vmatpush.bf16.msra.mxu1 %v1420_v58  ;;  %945 = vmatpush.bf16.msra.mxu2 %v1328_v59  ;;  %v1511_v19 = vld [vmem:[%s2097_s12 + $0xc8] sm:$0xf0]  ;;  %v1289_v22 = vld [vmem:[%s2097_s12 + $0xc] sm:$0xf0]  ;;  %v1510_v23 = vld [vmem:[%s2097_s12 + $0xc4] sm:$0xf]  ;;  %v1288_v32 = vor.u32 %v1487_v15, %v1287_v14 }
 0x171   : > { %964 = vmatpush.bf16.msra.mxu3 %v1424_v63  ;;  %v1385_v24 = vld [vmem:[%s2097_s12 + $0xcc] sm:$0xf0]  ;;  %v1271_v25 = vld [vmem:[#allocation2] sm:$0xf]  ;;  %v1483_v33 = vld [vmem:[#allocation2 + $0x4] sm:$0xf0]  ;;  %v1384_v36 = vor.u32 %v1511_v19, %v1383_v18  ;;  %v1292_v37 = vor.u32 %v1486_v20, %v1289_v22 }
 0x172   : > { %v1379_v26 = vld [vmem:[%s2097_s12 + $0xb0] sm:$0xf]  ;;  %v1509_v31 = vld [vmem:[%s2097_s12 + $0xb8] sm:$0xf0]  ;;  %v1482_v38 = vld [vmem:[#allocation2 + $0x4] sm:$0xf]  ;;  %v1388_v40 = vor.u32 %v1510_v23, %v1385_v24  ;;  %v2218_v46 = vor.u32 %v1483_v33, %v1271_v25 }
 0x173   : > { %908 = vmatpush.bf16.msra.mxu0 %v1312_v1  ;;  %v1475_v34 = vld [vmem:[%s2097_s12 + $0x170] sm:$0xf]  ;;  %v1533_v35 = vld [vmem:[%s2097_s12 + $0x178] sm:$0xf0]  ;;  %v1273_v39 = vld [vmem:[#allocation2 + $0x8] sm:$0xf0]  ;;  %v1380_v45 = vor.u32 %v1509_v31, %v1379_v26 }
 0x174   : > { %927 = vmatpush.bf16.msra.mxu1 %v1408_v2  ;;  %946 = vmatpush.bf16.msra.mxu2 %v1316_v3  ;;  %v1476_v29 = vor.u32 %v1533_v35, %v1475_v34  ;;  %v1367_v30 = vld [vmem:[%s2097_s12 + $0x98] sm:$0xf]  ;;  %v1506_v47 = vld [vmem:[%s2097_s12 + $0xa0] sm:$0xf0]  ;;  %v2222_v48 = vor.u32 %v1482_v38, %v1273_v39  ;;  %v1355_v51 = vld [vmem:[%s2097_s12 + $0x80] sm:$0xf] }
 0x175   : > { %965 = vmatpush.bf16.msra.mxu3 %v1412_v7  ;;  %v1463_v27 = vld [vmem:[%s2097_s12 + $0x158] sm:$0xf]  ;;  %v1530_v28 = vld [vmem:[%s2097_s12 + $0x160] sm:$0xf0]  ;;  %v1368_v49 = vor.u32 %v1506_v47, %v1367_v30  ;;  %v1503_v52 = vld [vmem:[%s2097_s12 + $0x88] sm:$0xf0] }
 0x176   : > { %v1464_v50 = vor.u32 %v1530_v28, %v1463_v27  ;;  %v1451_v53 = vld [vmem:[%s2097_s12 + $0x140] sm:$0xf]  ;;  %v1527_v54 = vld [vmem:[%s2097_s12 + $0x148] sm:$0xf0]  ;;  %v1356_v55 = vor.u32 %v1503_v52, %v1355_v51  ;;  %v1343_v57 = vld [vmem:[%s2097_s12 + $0x68] sm:$0xf] }
 0x177   : > { %909 = vmatpush.bf16.msra.mxu0 %v1300_v13  ;;  %v1452_v56 = vor.u32 %v1527_v54, %v1451_v53  ;;  %v1500_v58 = vld [vmem:[%s2097_s12 + $0x70] sm:$0xf0]  ;;  %v1439_v59 = vld [vmem:[%s2097_s12 + $0x128] sm:$0xf]  ;;  %v1279_v63 = vld [vmem:[#allocation2 + $0x10] sm:$0xf] }
 0x178   : > { %928 = vmatpush.bf16.msra.mxu1 %v1396_v16  ;;  %947 = vmatpush.bf16.msra.mxu2 %v1304_v17  ;;  %v1524_v60 = vld [vmem:[%s2097_s12 + $0x130] sm:$0xf0]  ;;  %v1344_v61 = vor.u32 %v1500_v58, %v1343_v57  ;;  %v1331_v0 = vld [vmem:[%s2097_s12 + $0x50] sm:$0xf]  ;;  %v1497_v41 = vld [vmem:[%s2097_s12 + $0x58] sm:$0xf0] }
 0x179   : > { %966 = vmatpush.bf16.msra.mxu3 %v1400_v21  ;;  %v1440_v62 = vor.u32 %v1524_v60, %v1439_v59  ;;  %v1485_v42 = vld [vmem:[#allocation2 + $0x14] sm:$0xf0]  ;;  %v1427_v43 = vld [vmem:[%s2097_s12 + $0x110] sm:$0xf]  ;;  %v1521_v44 = vld [vmem:[%s2097_s12 + $0x118] sm:$0xf0]  ;;  %v1332_v3 = vor.u32 %v1497_v41, %v1331_v0 }
 0x17a   : > { %v1484_v1 = vld [vmem:[#allocation2 + $0x14] sm:$0xf]  ;;  %v1281_v2 = vld [vmem:[#allocation2 + $0x18] sm:$0xf0]  ;;  %v1280_v4 = vor.u32 %v1485_v42, %v1279_v63  ;;  %v1428_v5 = vor.u32 %v1521_v44, %v1427_v43  ;;  %v1494_v7 = vld [vmem:[%s2097_s12 + $0x40] sm:$0xf0] }
 0x17b   : > { %910 = vmatpush.bf16.msra.mxu0 %v1288_v32  ;;  %v1319_v6 = vld [vmem:[%s2097_s12 + $0x38] sm:$0xf]  ;;  %v1284_v8 = vor.u32 %v1484_v1, %v1281_v2  ;;  %v1518_v10 = vld [vmem:[%s2097_s12 + $0x100] sm:$0xf0]  ;;  %v1307_v13 = vld [vmem:[%s2097_s12 + $0x20] sm:$0xf] }
 0x17c   : > { %929 = vmatpush.bf16.msra.mxu1 %v1384_v36  ;;  %948 = vmatpush.bf16.msra.mxu2 %v1292_v37  ;;  %v1415_v9 = vld [vmem:[%s2097_s12 + $0xf8] sm:$0xf]  ;;  %v1320_v11 = vor.u32 %v1494_v7, %v1319_v6  ;;  %v1491_v14 = vld [vmem:[%s2097_s12 + $0x28] sm:$0xf0]  ;;  %v1403_v15 = vld [vmem:[%s2097_s12 + $0xe0] sm:$0xf] }
 0x17d   : > { %967 = vmatpush.bf16.msra.mxu3 %v1388_v40  ;;  %v1416_v12 = vor.u32 %v1518_v10, %v1415_v9  ;;  %v1515_v16 = vld [vmem:[%s2097_s12 + $0xe8] sm:$0xf0]  ;;  %v1308_v17 = vor.u32 %v1491_v14, %v1307_v13  ;;  %v1295_v19 = vld [vmem:[%s2097_s12 + $0x8] sm:$0xf]  ;;  %v1488_v20 = vld [vmem:[%s2097_s12 + $0x10] sm:$0xf0] }
 0x17e   : > { %911 = vmatmul.bf16.vlgmr.msra.gmra.mxu0 %v2218_v46  ;;  %v1404_v18 = vor.u32 %v1515_v16, %v1403_v15  ;;  %v1391_v21 = vld [vmem:[%s2097_s12 + $0xc8] sm:$0xf]  ;;  %v1512_v22 = vld [vmem:[%s2097_s12 + $0xd0] sm:$0xf0]  ;;  %v1296_v23 = vor.u32 %v1488_v20, %v1295_v19  ;;  %v1056_v31 = vld [vmem:[%s2106_s30] sm:$0x7] }
 0x17f   : > { %930 = vmatmul.bf16.vlgmr.msra.gmra.mxu1 %v2222_v48  ;;  %949 = vmatmul.bf16.vlgmr.msra.gmra.mxu2 %v2218_v46  ;;  %v1392_v24 = vor.u32 %v1512_v22, %v1391_v21  ;;  %v1058_v33 = vperm.slane %v1056_v31, 0  ;;  %v1059_v35 = vperm.slane %v1056_v31, 1  ;;  %v1060_v42 = vperm.slane %v1056_v31, 2  ;;  %s1534_s28 = smul.u32 12, %s1905_s21  ;;  %s1108_s10 = sshll.u32 %s2108_s24, 4  ;;  %s1109_s10 = int_to_ptr.vmem [resolvable:$true] %s1108_s10 }
 0x180   : > { %1535 = vmatpush.bf16.msrb.mxu2 %v1380_v45  ;;  %968 = vmatmul.bf16.vlgmr.msra.gmra.mxu3 %v2222_v48  ;;  %s1093_s21 = scalar_lea.sflag [#allocation6], %s2094_s3  ;;  %s1843_s26 = scalar_lea.hbm %s2309_s5, 96 }
 0x181   : > { %1543 = vmatpush.bf16.msrb.mxu3 %v1476_v29  ;;  %979 = vmatpush.bf16.msrb.mxu0 %v1380_v45  ;;  %s1107_s15 = scalar_lea.hbm %s2309_s5, %s1534_s28 }
 0x182   : > { %998 = vmatpush.bf16.msrb.mxu1 %v1476_v29  ;;  %s1110_s18 = sshll.u32 %s1107_s15, 4  ;;  %s1111_s18 = int_to_ptr.hbm [resolvable:$true] %s1110_s18 }
 0x183   : > { %s1837_s14 = sshra.s32 %s1111_s18, 4  ;;  %s1838_s14 = int_to_ptr.hbm [resolvable:$true] %s1837_s14 }
 0x184   : > { %1536 = vmatpush.bf16.msrb.mxu2 %v1368_v49  ;;  %s1839_s16 = scalar_lea.hbm %s1838_s14, 48  ;;  %p1844_p12 = scmp.lt.s32.totalorder %s1838_s14, %s2309_s5 }
 0x185   : > { %1544 = vmatpush.bf16.msrb.mxu3 %v1464_v50  ;;  %980 = vmatpush.bf16.msrb.mxu0 %v1368_v49  ;;  %p1840_p5 = scmp.ne.s32.totalorder %s1838_s14, %s1839_s16  ;;  %p1845_p0 = scmp.lt.s32.totalorder %s1843_s26, %s1839_s16 }
 0x186   : > { %999 = vmatpush.bf16.msrb.mxu1 %v1464_v50 }
 0x187   : > { %p1841_p7 = pnand %p1840_p5, %p2009_p8  ;;  %p1846_p1 = por %p1845_p0, %p1844_p12 }
 0x188   : > { %1537 = vmatpush.bf16.msrb.mxu2 %v1356_v55 }
 0x189   : > { %1545 = vmatpush.bf16.msrb.mxu3 %v1452_v56  ;;  %981 = vmatpush.bf16.msrb.mxu0 %v1356_v55  ;;  %p1842_p11 = pneg %p1841_p7 }
 0x18a   : > { %1000 = vmatpush.bf16.msrb.mxu1 %v1452_v56 }
 0x18b   : > { %p1847_p2 = pnand %p1846_p1, %p1842_p11 }
 0x18c   : > { %1538 = vmatpush.bf16.msrb.mxu2 %v1344_v61 }
 0x18d   : > { %1546 = vmatpush.bf16.msrb.mxu3 %v1440_v62  ;;  %982 = vmatpush.bf16.msrb.mxu0 %v1344_v61 }
 0x18e   : > { %1001 = vmatpush.bf16.msrb.mxu1 %v1440_v62  ;;  %916 = vmatmul.bf16.gmra.mxu0 %v1280_v4 }
 0x18f   : > { %935 = vmatmul.bf16.gmra.mxu1 %v1284_v8  ;;  %954 = vmatmul.bf16.gmra.mxu2 %v1280_v4 }
 0x190   : > { %1539 = vmatpush.bf16.msrb.mxu2 %v1332_v3  ;;  %973 = vmatmul.bf16.gmra.mxu3 %v1284_v8 }
 0x191   : > { %1547 = vmatpush.bf16.msrb.mxu3 %v1428_v5  ;;  %983 = vmatpush.bf16.msrb.mxu0 %v1332_v3 }
 0x192   : > { %1002 = vmatpush.bf16.msrb.mxu1 %v1428_v5 }
 0x194   : > { %1540 = vmatpush.bf16.msrb.mxu2 %v1320_v11 }
 0x195   : > { %1548 = vmatpush.bf16.msrb.mxu3 %v1416_v12  ;;  %984 = vmatpush.bf16.msrb.mxu0 %v1320_v11 }
 0x196   : > { %1003 = vmatpush.bf16.msrb.mxu1 %v1416_v12 }
 0x198   : > { %1541 = vmatpush.bf16.msrb.mxu2 %v1308_v17 }
 0x199   : > { %1549 = vmatpush.bf16.msrb.mxu3 %v1404_v18  ;;  %985 = vmatpush.bf16.msrb.mxu0 %v1308_v17 }
 0x19a   : > { %1004 = vmatpush.bf16.msrb.mxu1 %v1404_v18 }
 0x19c   : > { %1542 = vmatpush.bf16.msrb.mxu2 %v1296_v23 }
 0x19d   : > { %1550 = vmatpush.bf16.msrb.mxu3 %v1392_v24  ;;  %986 = vmatpush.bf16.msrb.mxu0 %v1296_v23 }
 0x19e   : > { %1005 = vmatpush.bf16.msrb.mxu1 %v1392_v24 }
 0x19f   : > { %992 = vmatmul.bf16.vlgmr.msrb.gmra.mxu2 %v1280_v4 }
 0x1a0   : > { %987 = vmatmul.bf16.vlgmr.msrb.gmra.mxu0 %v2218_v46  ;;  %1011 = vmatmul.bf16.vlgmr.msrb.gmra.mxu3 %v1284_v8 }
 0x1a1   : > { %1006 = vmatmul.bf16.vlgmr.msrb.gmra.mxu1 %v2222_v48 }
 0x1fb   : > { %v912_v25 = vpop.f32.mrf.mxu0 }
 0x1fc   : > { %v931_v26 = vpop.f32.mrf.mxu1 }
 0x1fd   : > { %v932_v32 = vadd.f32 %v931_v26, %v912_v25 }
 0x1ff   : > { %v1064_v38 = vadd.f32 %v1058_v33, %v932_v32 }
 0x202   : > { %v950_v34 = vpop.f32.mrf.mxu2 }
 0x203   : > { %v969_v36 = vpop.f32.mrf.mxu3  ;;  %v914_v37 = vpop.f32.mrf.mxu0 }
 0x204   : > { %v970_v39 = vadd.f32 %v969_v36, %v950_v34  ;;  %v933_v40 = vpop.f32.mrf.mxu1 }
 0x205   : > { %v934_v29 = vadd.f32 %v933_v40, %v914_v37 }
 0x206   : > { %v1065_v45 = vadd.f32 %v1059_v35, %v970_v39 }
 0x207   : > { %v1067_v49 = vadd.f32 %v1058_v33, %v934_v29 }
 0x208   : > { %v1076_v46 = vpack.c.bf16 %v1065_v45, %v1064_v38 }
 0x20a   : > { %1084 = vst [vmem:[%s2108_s24] sm:$0xff] %v1076_v46  ;;  %v952_v30 = vpop.f32.mrf.mxu2 }
 0x20b   : > { %v971_v47 = vpop.f32.mrf.mxu3  ;;  %v917_v48 = vpop.f32.mrf.mxu0 }
 0x20c   : > { %v972_v27 = vadd.f32 %v971_v47, %v952_v30  ;;  %v936_v28 = vpop.f32.mrf.mxu1 }
 0x20d   : > { %v937_v52 = vadd.f32 %v936_v28, %v917_v48 }
 0x20e   : > { %v1068_v50 = vadd.f32 %v1059_v35, %v972_v27 }
 0x20f   : > { %v1070_v56 = vadd.f32 %v1058_v33, %v937_v52 }
 0x210   : > { %v1078_v51 = vpack.c.bf16 %v1068_v50, %v1067_v49 }
 0x212   : > { %1086 = vst [vmem:[%s2108_s24 + $0xc] sm:$0xff] %v1078_v51  ;;  %v955_v53 = vpop.f32.mrf.mxu2 }
 0x213   : > { %v974_v54 = vpop.f32.mrf.mxu3  ;;  %v919_v55 = vpop.f32.mrf.mxu0 }
 0x214   : > { %v975_v57 = vadd.f32 %v974_v54, %v955_v53  ;;  %v938_v58 = vpop.f32.mrf.mxu1 }
 0x215   : > { %v939_v61 = vadd.f32 %v938_v58, %v919_v55 }
 0x216   : > { %v1071_v59 = vadd.f32 %v1059_v35, %v975_v57 }
 0x217   : > { %v1073_v44 = vadd.f32 %v1058_v33, %v939_v61 }
 0x218   : > { %v1080_v60 = vpack.c.bf16 %v1071_v59, %v1070_v56 }
 0x21a   : > { %1088 = vst [vmem:[%s2108_s24 + $0x18] sm:$0xff] %v1080_v60  ;;  %v957_v62 = vpop.f32.mrf.mxu2 }
 0x21b   : > { %v976_v63 = vpop.f32.mrf.mxu3 }
 0x21c   : > { %v977_v0 = vadd.f32 %v976_v63, %v957_v62 }
 0x21d   : > { %v988_v41 = vpop.f32.mrf.mxu0 }
 0x21e   : > { %v1007_v43 = vpop.f32.mrf.mxu1  ;;  %v1074_v1 = vadd.f32 %v1059_v35, %v977_v0 }
 0x21f   : > { %v1008_v2 = vadd.f32 %v1007_v43, %v988_v41 }
 0x220   : > { %v1082_v3 = vpack.c.bf16 %v1074_v1, %v1073_v44 }
 0x221   : > { %v1066_v4 = vadd.f32 %v1060_v42, %v1008_v2 }
 0x222   : > { %1090 = vst [vmem:[%s2108_s24 + $0x24] sm:$0xff] %v1082_v3  ;;  %v993_v6 = vpop.f32.mrf.mxu2 }
 0x223   : > { %v1077_v5 = vpack.c.bf16 %v1066_v4, %v1066_v4  ;;  %v1012_v7 = vpop.f32.mrf.mxu3 }
 0x224   : > { %v1013_v8 = vadd.f32 %v1012_v7, %v993_v6 }
 0x225   : > { %1085 = vst [vmem:[%s2108_s24 + $0x8] sm:$0xf] %v1077_v5  ;;  %v990_v9 = vpop.f32.mrf.mxu0 }
 0x226   : > { %v1009_v10 = vpop.f32.mrf.mxu1  ;;  %v1072_v11 = vadd.f32 %v1060_v42, %v1013_v8 }
 0x227   : > { %v1010_v12 = vadd.f32 %v1009_v10, %v990_v9 }
 0x228   : > { %v1081_v13 = vpack.c.bf16 %v1072_v11, %v1072_v11 }
 0x229   : > { %v1069_v14 = vadd.f32 %v1060_v42, %v1010_v12 }
 0x22a   : > { %1089 = vst [vmem:[%s2108_s24 + $0x20] sm:$0xf] %v1081_v13  ;;  %v995_v16 = vpop.f32.mrf.mxu2 }
 0x22b   : > { %v1079_v15 = vpack.c.bf16 %v1069_v14, %v1069_v14  ;;  %v1014_v17 = vpop.f32.mrf.mxu3 }
 0x22c   : > { %v1015_v18 = vadd.f32 %v1014_v17, %v995_v16 }
 0x22d   : > { %1087 = vst [vmem:[%s2108_s24 + $0x14] sm:$0xf] %v1079_v15 }
 0x22e   : > { %v1075_v19 = vadd.f32 %v1060_v42, %v1015_v18 }
 0x230   : > { %v1083_v20 = vpack.c.bf16 %v1075_v19, %v1075_v19 }
 0x232   : > { %1091 = vst [vmem:[%s2108_s24 + $0x2c] sm:$0xf] %v1083_v20 }
 0x233   : > { %1850 = shalt.err (!%p1847_p2)
}
 0x234   : > { %s1924_s7 = smov 192   ;;  %s1925_s0 = smov 384  }
 0x235   : > { %s1926_s3 = smov 12  }
 0x236   : > { %1572 = dma.vmem_to_hbm [thread:$0]  (%p2009_p8), %s1109_s10, 768, %s1111_s18, %s1093_s21, %s1924_s7, %s1925_s0, %s1926_s3  }
 0x237 PF: > { %s2335_s23 = sld [smem:[#allocation18_spill]]  ;;  %p1592_p4 = pnand %p1262_p13, %p2013_p9 }
 0x238   : > { %s2337_s12 = sld [smem:[#allocation19_spill]] }
 0x239   : > { %p1593_p6 = pneg %p1592_p4 }
 0x23d   : > { %s1125_s13 = sand.u32 1, %s2335_s23  }
 0x23e   : > { %s1126_s6 = scalar_lea.sflag [#allocation6], %s1125_s13 }
 0x23f   : > { %1888 = dma.done.wait (%p1593_p6), %s1126_s6, 768  }
 0x240   : > { %1890 = vsyncadd (%p1593_p6), %s1126_s6, 4294966528  ;;  %s23_s23 = sadd.s32 1, %s2337_s12   ;;  %s2338_s30 = sld [smem:[#allocation22_spill]] }
 0x241   : > { %p20_p10 = scmp.ge.s32.totalorder %s23_s23, 4   ;;  %s2339_s29 = sld [smem:[#allocation21_spill]] }
 0x242   : > { %s2340_s18 = smov %s1897_s19  ;;  %s2341_s19 = smov %s1901_s20 }
 0x243   : > { %s2343_s21 = smov %s1909_s22  ;;  %22 = sbr.rel (!%p20_p10) target bundleno = 12 (0xc), region = 123 }
 0x246   : > { %s2342_s20 = smov %s2338_s30 }
 0x247   : > { %s2344_s22 = smov %s2339_s29 }
 0x248   :  { %1132 = vsyncpa [#allocation5], 1 }
 0x249   :  { %1134 = vsyncpa [#allocation5 + $0x1], 1 }
 0x24a   :  { %1135 = vsyncpa [#allocation8], 1 }
 0x24b   :  { %1136 = vsyncpa [#allocation11], 1 }
 0x24c   :  { %1138 = vsyncpa [#allocation11 + $0x1], 1 }
 0x24d   :  { %1139 = vsyncpa [#allocation6], 1 }
 0x24e   :  { %1141 = vsyncpa [#allocation6 + $0x1], 1 }

</bundles_post_ra>
